<compile_context>
chip_gen: v6e
topology: v6e:2x2x1
jax: 0.10.0
libtpu: 0.0.40
codegen_flags: <defaults>
</compile_context>

<pallas_src>
import numpy as np
import jax
import jax.numpy as jnp
from jax.experimental import pallas as pl
from jax.experimental.pallas import tpu as pltpu

POOL_SIZES = (1, 2, 3, 6)
M_TOTAL = sum(k * k for k in POOL_SIZES)          # 50 pooled values per channel


# ------------------------- glue: small linear operators -------------------------

def _adaptive_avg_pool_matrix(n, k):
    """(k, n) matrix implementing PyTorch AdaptiveAvgPool1d(n -> k)."""
    A = np.zeros((k, n), dtype=np.float32)
    for i in range(k):
        start = (i * n) // k
        end = -(-((i + 1) * n) // k)              # ceil((i+1)*n/k)
        A[i, start:end] = 1.0 / (end - start)
    return A


def _bilinear_upsample_matrix(n, k):
    """(n, k) matrix implementing bilinear upsample k -> n, align_corners=True."""
    B = np.zeros((n, k), dtype=np.float32)
    if k == 1:
        B[:, 0] = 1.0
        return B
    for i in range(n):
        s = i * (k - 1) / (n - 1) if n > 1 else 0.0
        i0 = min(int(np.floor(s)), k - 1)
        i1 = min(i0 + 1, k - 1)
        w1 = s - i0
        B[i, i0] += 1.0 - w1
        B[i, i1] += w1
    return B


def _build_operators(H, W):
    """Fused pooling operator and per-scale upsample operators.

    pool_hw : (H*W, 50)  pool_hw[h*W+w, (s,i,j)] = Ah_s[i,h] * Aw_s[j,w]
    us      : per scale (k^2, H*W), us[s][i*k+j, h*W+w] = Bh_s[h,i] * Bw_s[w,j]
    """
    HW = H * W
    pool_hw = np.zeros((HW, M_TOTAL), dtype=np.float32)
    us = []
    off = 0
    for k in POOL_SIZES:
        Ah = _adaptive_avg_pool_matrix(H, k)       # (k, H)
        Aw = _adaptive_avg_pool_matrix(W, k)       # (k, W)
        Bh = _bilinear_upsample_matrix(H, k)       # (H, k)
        Bw = _bilinear_upsample_matrix(W, k)       # (W, k)
        pool_hw[:, off:off + k * k] = np.einsum(
            "ih,jw->hwij", Ah, Aw).reshape(HW, k * k)
        u = np.einsum("hi,wj->ijhw", Bh, Bw).reshape(k * k, HW)
        us.append(np.ascontiguousarray(u, dtype=np.float32))
        off += k * k
    return pool_hw, us


# ------------------------------- Pallas kernel ----------------------------------

def pspd_kernel(x_ref, pool_ref, u1_ref, u2_ref, u3_ref, u4_ref, o_ref):
    # x_ref   : (1, TC, H*W)   lane-dense flat-spatial input tile (read once)
    # pool_ref: (H*W, 50)      fused 2-D adaptive-pool operator, all 4 scales
    # u*_ref  : (k^2, H*W)     per-scale bilinear upsample operators
    # o_ref   : (1, 5, TC, H*W)   [x, feat1, feat2, feat3, feat4] along dim 1
    x = x_ref[0]                                                     # (TC, HW)

    # slot 0: identity -- plain lane-dense VMEM copy.
    o_ref[0, 0] = x

    # ---- adaptive pooling: ONE matmul, contraction dim = H*W (>=128) ----------
    p = jnp.dot(x, pool_ref[...], preferred_element_type=jnp.float32)  # (TC, 50)

    # ---- upsample: one wide, lane-dense matmul per scale -----------------------
    u_refs = (u1_ref, u2_ref, u3_ref, u4_ref)
    off = 0
    for s, k in enumerate(POOL_SIZES):
        ps = p[:, off:off + k * k]                                   # (TC, k^2)
        if k == 1:
            # rank-1 (global mean broadcast): VPU broadcast-multiply, no MXU.
            feat = ps * u_refs[s][...]
        else:
            feat = jnp.dot(ps, u_refs[s][...],
                           preferred_element_type=jnp.float32)       # (TC, HW)
        if feat.dtype != o_ref.dtype:
            feat = feat.astype(o_ref.dtype)
        o_ref[0, s + 1] = feat
        off += k * k


# --------------------------------- wrapper --------------------------------------

def _vmem_capacity_bytes():
    """Best-effort per-core VMEM capacity; conservative 64 MiB (v7x) fallback."""
    try:
        cap = int(pltpu.get_tpu_info().vmem_capacity_bytes)
        if cap > 0:
            return cap
    except Exception:
        pass
    return 64 * 1024 * 1024


def _const_spec(shape):
    """BlockSpec for a loop-invariant operator: single-buffered when supported."""
    idx = lambda b, cb: (0,) * len(shape)
    try:
        return pl.BlockSpec(shape, idx, pipeline_mode=pl.Buffered(1))
    except Exception:
        return pl.BlockSpec(shape, idx)


def _pick_channel_tile(B, C, per_c_bytes, budget_bytes):
    """Largest layout-legal channel tile (multiple of 8 dividing C, or C itself)
    that fits the VMEM budget, preferring tiles that leave >=2 grid steps so both
    v7x TensorCores get work."""
    cands = sorted({C} | {d for d in range(8, C, 8) if C % d == 0})
    fits = [d for d in cands if d * per_c_bytes <= budget_bytes] or [min(cands)]
    multi = [d for d in fits if B * (C // d) >= 2]
    return max(multi) if multi else max(fits)


def pspd(x, *, channel_tile=None):
    """x: (B, C, H, W) float32  ->  (B, 5*C, H, W) float32."""
    B, C, H, W = x.shape
    HW = H * W
    pool_np, us_np = _build_operators(H, W)
    pool_hw = jnp.asarray(pool_np)
    u1, u2, u3, u4 = (jnp.asarray(u) for u in us_np)

    # --- VMEM plan: couple channel tile and vmem_limit to device capacity -------
    vmem_cap = _vmem_capacity_bytes()
    # per-channel double-buffered bytes: input(2x) + output(2x5) + ~2x compute temps
    per_c = (2 + 2 * 5 + 2) * HW * 4
    # constant operators: pool_hw (HW x 50) + sum(u) (50 x HW); worst case 2 bufs
    const_bytes = 2 * (2 * M_TOTAL * HW * 4)
    budget = max(per_c, int(0.55 * vmem_cap) - const_bytes)
    tc = channel_tile if channel_tile is not None else _pick_channel_tile(
        B, C, per_c, budget)
    assert C % tc == 0, f"channel tile {tc} must divide C={C}"
    working_set = tc * per_c + const_bytes + (2 << 20)        # + margin
    vmem_limit = int(min(max(working_set, 32 << 20), 0.9 * vmem_cap))

    # --- scheduling hint: 1 read + 5 writes of the feature map, tiny matmuls ----
    cost = pl.CostEstimate(
        flops=2 * B * C * HW * (M_TOTAL + sum(k * k for k in POOL_SIZES if k > 1)),
        transcendentals=0,
        bytes_accessed=(6 * B * C * HW + 2 * M_TOTAL * HW) * 4,
    )

    in_specs = [
        pl.BlockSpec((1, tc, HW), lambda b, cb: (b, cb, 0)),      # x (flat view)
        _const_spec((HW, M_TOTAL)),                               # fused pool op
    ] + [_const_spec((k * k, HW)) for k in POOL_SIZES]            # upsample ops

    out5 = pl.pallas_call(
        pspd_kernel,
        out_shape=jax.ShapeDtypeStruct((B, 5, C, HW), x.dtype),
        grid=(B, C // tc),
        in_specs=in_specs,
        out_specs=pl.BlockSpec((1, 5, tc, HW), lambda b, cb: (b, 0, cb, 0)),
        compiler_params=pltpu.CompilerParams(
            dimension_semantics=("parallel", "parallel"),
            vmem_limit_bytes=vmem_limit,
        ),
        cost_estimate=cost,
    )(x.reshape(B, C, HW), pool_hw, u1, u2, u3, u4)

    # (B, 5, C, H*W) -> (B, 5C, H, W): free reshape; scale index varies slower than
    # channel, matching torch.cat((x, feat1, feat2, feat3, feat4), dim=1).
    return out5.reshape(B, 5 * C, H, W)


# ----------------------------- reference (numpy) --------------------------------

def ref_pspd(x_np):
    B, C, H, W = x_np.shape
    outs = [x_np.astype(np.float32)]
    for k in POOL_SIZES:
        pooled = np.zeros((B, C, k, k), dtype=np.float32)
        for i in range(k):
            hs, he = (i * H) // k, -(-((i + 1) * H) // k)
            for j in range(k):
                ws, we = (j * W) // k, -(-((j + 1) * W) // k)
                pooled[:, :, i, j] = x_np[:, :, hs:he, ws:we].mean(axis=(2, 3))
        Bh = _bilinear_upsample_matrix(H, k)
        Bw = _bilinear_upsample_matrix(W, k)
        up = np.einsum("hk,bckl,wl->bchw", Bh, pooled, Bw)
        outs.append(up.astype(np.float32))
    return np.concatenate(outs, axis=1)


if __name__ == "__main__":
    key = jax.random.PRNGKey(0)
    x = jax.random.normal(key, (2, 4, 16, 16), dtype=jnp.float32)

    out = jax.block_until_ready(jax.jit(pspd)(x))
    assert out.shape == (2, 5 * 4, 16, 16)

    ref = ref_pspd(np.asarray(x))
    np.testing.assert_allclose(np.asarray(out), ref, rtol=1e-5, atol=1e-5)
    print("KERNEL_OK")
</pallas_src>

<mosaic_0001>
module attributes {stable_mosaic.version = 11 : i64} {
  func.func @pspd_kernel(%arg0: i32, %arg1: i32, %arg2: memref<1x4x256xf32, #tpu.memory_space<vmem>>, %arg3: memref<256x50xf32, #tpu.memory_space<vmem>>, %arg4: memref<1x256xf32, #tpu.memory_space<vmem>>, %arg5: memref<4x256xf32, #tpu.memory_space<vmem>>, %arg6: memref<9x256xf32, #tpu.memory_space<vmem>>, %arg7: memref<36x256xf32, #tpu.memory_space<vmem>>, %arg8: memref<1x5x4x256xf32, #tpu.memory_space<vmem>>) attributes {dimension_semantics = [#tpu.dimension_semantics<parallel>, #tpu.dimension_semantics<parallel>], iteration_bounds = array<i64: 2, 1>, scalar_prefetch = 0 : i64, scratch_operands = 0 : i64, tpu.core_type = #tpu.core_type<tc>, window_params = [{transform_indices = @transform_0, window_bounds = array<i64: 1, 4, 256>}, {pipeline_mode = #tpu.pipeline_mode<synchronous>, transform_indices = @transform_1, window_bounds = array<i64: 256, 50>}, {pipeline_mode = #tpu.pipeline_mode<synchronous>, transform_indices = @transform_2, window_bounds = array<i64: 1, 256>}, {pipeline_mode = #tpu.pipeline_mode<synchronous>, transform_indices = @transform_3, window_bounds = array<i64: 4, 256>}, {pipeline_mode = #tpu.pipeline_mode<synchronous>, transform_indices = @transform_4, window_bounds = array<i64: 9, 256>}, {pipeline_mode = #tpu.pipeline_mode<synchronous>, transform_indices = @transform_5, window_bounds = array<i64: 36, 256>}, {transform_indices = @transform_6, window_bounds = array<i64: 1, 5, 4, 256>}]} {
    %c0 = arith.constant 0 : index
    %c0_0 = arith.constant 0 : index
    %c0_1 = arith.constant 0 : index
    %0 = vector.load %arg2[%c0, %c0_0, %c0_1] : memref<1x4x256xf32, #tpu.memory_space<vmem>>, vector<1x4x256xf32>
    %1 = vector.shape_cast %0 : vector<1x4x256xf32> to vector<4x256xf32>
    %c0_2 = arith.constant 0 : index
    %c0_3 = arith.constant 0 : index
    %c0_4 = arith.constant 0 : index
    %c0_5 = arith.constant 0 : index
    %2 = vector.load %arg8[%c0_2, %c0_3, %c0_4, %c0_5] : memref<1x5x4x256xf32, #tpu.memory_space<vmem>>, vector<1x1x4x256xf32>
    %3 = vector.shape_cast %2 : vector<1x1x4x256xf32> to vector<4x256xf32>
    %4 = vector.shape_cast %1 : vector<4x256xf32> to vector<1x1x4x256xf32>
    tpu.vector_store %arg8[%c0_2, %c0_3, %c0_4, %c0_5], %4 {strides = array<i32>} : memref<1x5x4x256xf32, #tpu.memory_space<vmem>>, vector<1x1x4x256xf32>,
    %c0_6 = arith.constant 0 : index
    %c0_7 = arith.constant 0 : index
    %5 = vector.load %arg3[%c0_6, %c0_7] : memref<256x50xf32, #tpu.memory_space<vmem>>, vector<256x50xf32>
    %cst = arith.constant dense<0.000000e+00> : vector<4x50xf32>
    %6 = tpu.matmul %1, %5, %cst {dimension_numbers = #tpu.dot_dimension_numbers<[1], [0], [0], [1], [0, 0, 1, 1], [], []>} : vector<4x256xf32>, vector<256x50xf32>, vector<4x50xf32> -> vector<4x50xf32>
    %7 = vector.extract_strided_slice %6 {offsets = [0, 0], sizes = [4, 1], strides = [1, 1]} : vector<4x50xf32> to vector<4x1xf32>
    %c0_8 = arith.constant 0 : index
    %c0_9 = arith.constant 0 : index
    %8 = vector.load %arg4[%c0_8, %c0_9] : memref<1x256xf32, #tpu.memory_space<vmem>>, vector<1x256xf32>
    %9 = vector.broadcast %7 : vector<4x1xf32> to vector<4x256xf32>
    %10 = vector.broadcast %8 : vector<1x256xf32> to vector<4x256xf32>
    %11 = arith.mulf %9, %10 : vector<4x256xf32>
    %c0_10 = arith.constant 0 : index
    %c1 = arith.constant 1 : index
    %c0_11 = arith.constant 0 : index
    %c0_12 = arith.constant 0 : index
    %12 = vector.load %arg8[%c0_10, %c1, %c0_11, %c0_12] : memref<1x5x4x256xf32, #tpu.memory_space<vmem>>, vector<1x1x4x256xf32>
    %13 = vector.shape_cast %12 : vector<1x1x4x256xf32> to vector<4x256xf32>
    %14 = vector.shape_cast %11 : vector<4x256xf32> to vector<1x1x4x256xf32>
    tpu.vector_store %arg8[%c0_10, %c1, %c0_11, %c0_12], %14 {strides = array<i32>} : memref<1x5x4x256xf32, #tpu.memory_space<vmem>>, vector<1x1x4x256xf32>,
    %15 = vector.extract_strided_slice %6 {offsets = [0, 1], sizes = [4, 4], strides = [1, 1]} : vector<4x50xf32> to vector<4x4xf32>
    %c0_13 = arith.constant 0 : index
    %c0_14 = arith.constant 0 : index
    %16 = vector.load %arg5[%c0_13, %c0_14] : memref<4x256xf32, #tpu.memory_space<vmem>>, vector<4x256xf32>
    %cst_15 = arith.constant dense<0.000000e+00> : vector<4x256xf32>
    %17 = tpu.matmul %15, %16, %cst_15 {dimension_numbers = #tpu.dot_dimension_numbers<[1], [0], [0], [1], [0, 0, 1, 1], [], []>} : vector<4x4xf32>, vector<4x256xf32>, vector<4x256xf32> -> vector<4x256xf32>
    %c0_16 = arith.constant 0 : index
    %c2 = arith.constant 2 : index
    %c0_17 = arith.constant 0 : index
    %c0_18 = arith.constant 0 : index
    %18 = vector.load %arg8[%c0_16, %c2, %c0_17, %c0_18] : memref<1x5x4x256xf32, #tpu.memory_space<vmem>>, vector<1x1x4x256xf32>
    %19 = vector.shape_cast %18 : vector<1x1x4x256xf32> to vector<4x256xf32>
    %20 = vector.shape_cast %17 : vector<4x256xf32> to vector<1x1x4x256xf32>
    tpu.vector_store %arg8[%c0_16, %c2, %c0_17, %c0_18], %20 {strides = array<i32>} : memref<1x5x4x256xf32, #tpu.memory_space<vmem>>, vector<1x1x4x256xf32>,
    %21 = vector.extract_strided_slice %6 {offsets = [0, 5], sizes = [4, 9], strides = [1, 1]} : vector<4x50xf32> to vector<4x9xf32>
    %c0_19 = arith.constant 0 : index
    %c0_20 = arith.constant 0 : index
    %22 = vector.load %arg6[%c0_19, %c0_20] : memref<9x256xf32, #tpu.memory_space<vmem>>, vector<9x256xf32>
    %cst_21 = arith.constant dense<0.000000e+00> : vector<4x256xf32>
    %23 = tpu.matmul %21, %22, %cst_21 {dimension_numbers = #tpu.dot_dimension_numbers<[1], [0], [0], [1], [0, 0, 1, 1], [], []>} : vector<4x9xf32>, vector<9x256xf32>, vector<4x256xf32> -> vector<4x256xf32>
    %c0_22 = arith.constant 0 : index
    %c3 = arith.constant 3 : index
    %c0_23 = arith.constant 0 : index
    %c0_24 = arith.constant 0 : index
    %24 = vector.load %arg8[%c0_22, %c3, %c0_23, %c0_24] : memref<1x5x4x256xf32, #tpu.memory_space<vmem>>, vector<1x1x4x256xf32>
    %25 = vector.shape_cast %24 : vector<1x1x4x256xf32> to vector<4x256xf32>
    %26 = vector.shape_cast %23 : vector<4x256xf32> to vector<1x1x4x256xf32>
    tpu.vector_store %arg8[%c0_22, %c3, %c0_23, %c0_24], %26 {strides = array<i32>} : memref<1x5x4x256xf32, #tpu.memory_space<vmem>>, vector<1x1x4x256xf32>,
    %27 = vector.extract_strided_slice %6 {offsets = [0, 14], sizes = [4, 36], strides = [1, 1]} : vector<4x50xf32> to vector<4x36xf32>
    %c0_25 = arith.constant 0 : index
    %c0_26 = arith.constant 0 : index
    %28 = vector.load %arg7[%c0_25, %c0_26] : memref<36x256xf32, #tpu.memory_space<vmem>>, vector<36x256xf32>
    %cst_27 = arith.constant dense<0.000000e+00> : vector<4x256xf32>
    %29 = tpu.matmul %27, %28, %cst_27 {dimension_numbers = #tpu.dot_dimension_numbers<[1], [0], [0], [1], [0, 0, 1, 1], [], []>} : vector<4x36xf32>, vector<36x256xf32>, vector<4x256xf32> -> vector<4x256xf32>
    %c0_28 = arith.constant 0 : index
    %c4 = arith.constant 4 : index
    %c0_29 = arith.constant 0 : index
    %c0_30 = arith.constant 0 : index
    %30 = vector.load %arg8[%c0_28, %c4, %c0_29, %c0_30] : memref<1x5x4x256xf32, #tpu.memory_space<vmem>>, vector<1x1x4x256xf32>
    %31 = vector.shape_cast %30 : vector<1x1x4x256xf32> to vector<4x256xf32>
    %32 = vector.shape_cast %29 : vector<4x256xf32> to vector<1x1x4x256xf32>
    tpu.vector_store %arg8[%c0_28, %c4, %c0_29, %c0_30], %32 {strides = array<i32>} : memref<1x5x4x256xf32, #tpu.memory_space<vmem>>, vector<1x1x4x256xf32>,
    return
  }
  func.func @transform_0(%arg0: i32, %arg1: i32) -> (i32, i32, i32) {
    %c0_i32 = arith.constant 0 : i32
    %c0_i32_0 = arith.constant 0 : i32
    return %arg0, %arg1, %c0_i32 : i32, i32, i32
  }
  func.func @transform_1(%arg0: i32, %arg1: i32) -> (i32, i32) {
    %c0_i32 = arith.constant 0 : i32
    %c0_i32_0 = arith.constant 0 : i32
    %c0_i32_1 = arith.constant 0 : i32
    return %c0_i32, %c0_i32_0 : i32, i32
  }
  func.func @transform_2(%arg0: i32, %arg1: i32) -> (i32, i32) {
    %c0_i32 = arith.constant 0 : i32
    %c0_i32_0 = arith.constant 0 : i32
    %c0_i32_1 = arith.constant 0 : i32
    return %c0_i32, %c0_i32_0 : i32, i32
  }
  func.func @transform_3(%arg0: i32, %arg1: i32) -> (i32, i32) {
    %c0_i32 = arith.constant 0 : i32
    %c0_i32_0 = arith.constant 0 : i32
    %c0_i32_1 = arith.constant 0 : i32
    return %c0_i32, %c0_i32_0 : i32, i32
  }
  func.func @transform_4(%arg0: i32, %arg1: i32) -> (i32, i32) {
    %c0_i32 = arith.constant 0 : i32
    %c0_i32_0 = arith.constant 0 : i32
    %c0_i32_1 = arith.constant 0 : i32
    return %c0_i32, %c0_i32_0 : i32, i32
  }
  func.func @transform_5(%arg0: i32, %arg1: i32) -> (i32, i32) {
    %c0_i32 = arith.constant 0 : i32
    %c0_i32_0 = arith.constant 0 : i32
    %c0_i32_1 = arith.constant 0 : i32
    return %c0_i32, %c0_i32_0 : i32, i32
  }
  func.func @transform_6(%arg0: i32, %arg1: i32) -> (i32, i32, i32, i32) {
    %c0_i32 = arith.constant 0 : i32
    %c0_i32_0 = arith.constant 0 : i32
    %c0_i32_1 = arith.constant 0 : i32
    return %arg0, %c0_i32, %arg1, %c0_i32_0 : i32, i32, i32, i32
  }
}

</mosaic_0001>

<bundles_post_ra>
// kernel: pspd.1
= control target key start
LH: loop header
LB: loop body
LE: loop exit
PB: predicated region body
PF: predicated region fallthrough
CT: control target
= control target key end

     0   :  { %11 = vsyncpa [#allocation3], 0  ;;  %s1026_s21 = smov 0   ;;  %s1028_s22 = smov 0   ;;  %s1146_s0 = inlined_call_operand.vmem [shape: f32[2,4,256], index: 0, kind: input, shape index: {}]   ;;  %s1147_s1 = inlined_call_operand.hbm [shape: f32[256,50], index: 1, kind: input, shape index: {}]   ;;  %s1148_s2 = inlined_call_operand.vmem [shape: f32[1,256], index: 2, kind: input, shape index: {}]   ;;  %s1149_s3 = inlined_call_operand.vmem [shape: f32[4,256], index: 3, kind: input, shape index: {}]   ;;  %s1150_s4 = inlined_call_operand.vmem [shape: f32[9,256], index: 4, kind: input, shape index: {}]   ;;  %s1151_s5 = inlined_call_operand.vmem [shape: f32[36,256], index: 5, kind: input, shape index: {}]   ;;  %s1152_s6 = inlined_call_operand.vmem [shape: f32[2,5,4,256], index: 6, kind: output, shape index: {}]  }
   0x1   :  { %s1030_s23 = smov 0  }
   0x2 LB: > { %s821_s24 = sadd.s32 4294967295, %s981_s23   ;;  %s29_s25 = sadd.s32 1, %s977_s22  ;;  %s981_s23 = sphi %s1030_s23, %s17_s23   ;;  %s977_s22 = sphi %s1028_s22, %s1156_s22   ;;  %s973_s21 = sphi %s1026_s21, %s1155_s21  }
   0x3   : > { %p31_p0 = scmp.ge.s32.totalorder %s29_s25, 2  ;;  %p823_p1 = scmp.ge.s32.totalorder %s981_s23, 1 }
   0x4   : > { %p195_p2 = scmp.lt.s32.totalorder %s981_s23, 3  ;;  %p1051_p4 = scmp.eq.s32.totalorder %s821_s24, 0 }
   0x5   : > { %s1158_s25 = smov (%p31_p0, %s29_s25), 0  ;;  %s983_s28 = smov [#allocation2]  }
   0x6   : > { %p1047_p3 = pnand %p823_p1, %p195_p2  ;;  %s207_s29 = sshll.u32 %s983_s28, 4  ;;  %s208_s29 = int_to_ptr.vmem [resolvable:$true] %s207_s29 }
   0x7   : > { %s940_s30 = scalar_lea.vmem %s208_s29, 4096  ;;  %p948_p11 = scmp.lt.s32.totalorder %s208_s29, %s208_s29 }
   0x8   : > { %p887_p5 = pneg %p1047_p3  ;;  %p941_p8 = scmp.ne.s32.totalorder %s208_s29, %s940_s30 }
   0x9   : > { %p949_p12 = scmp.lt.s32.totalorder %s940_s30, %s940_s30 }
   0xa   : > { %p888_p6 = pnand %p1051_p4, %p887_p5 }
   0xb   : > { %p950_p13 = por %p949_p12, %p948_p11 }
   0xc   : > { %p931_p7 = pneg %p888_p6 }
   0xe   : > { %p943_p9 = pnand %p941_p8, %p931_p7 }
  0x10   : > { %p944_p10 = pneg %p943_p9 }
  0x12   : > { %p951_p0 = pnand %p950_p13, %p944_p10 }
  0x14   : > { %954 = shalt.err (!%p951_p0)
}
  0x15   : > { %s984_s7 = smov 128   ;;  %s985_s8 = smov 8  }
  0x16   : > { %890 = dma.hbm_to_vmem [thread:$0]  (!%p888_p6), %s1147_s1, 4096, %s208_s29, [#allocation3], %s984_s7, %s984_s7, %s985_s8  }
  0x17   : > { %247 = sbr.rel (%p1047_p3) target bundleno = 586 (0x24a), region = 44 }
  0x1c   : > { %968 = dma.done.wait (%p1051_p4), [#allocation3], 4096  }
  0x1d   : > { %970 = vsyncadd (%p1051_p4), [#allocation3], 4294963200  ;;  %p285_p1 = scmp.lt.s32.totalorder %s973_s21, 1  ;;  %v336_v0 = vld [vmem:[#allocation2 + $0xf8] sm:$0xff]  ;;  %v335_v2 = vld [vmem:[#allocation2 + $0xf0] sm:$0xff]  ;;  %v986_v34 = vmov 0   ;;  %v417_v42 = vlaneseq }
  0x1e   : > { %v320_v1 = vld [vmem:[#allocation2 + $0x78] sm:$0xff]  ;;  %847 = vmatprep.subr.mxu0 %v336_v0  ;;  %v319_v3 = vld [vmem:[#allocation2 + $0x70] sm:$0xff]  ;;  %v334_v4 = vld [vmem:[#allocation2 + $0xe8] sm:$0xff]  ;;  %925 = vset.pattern.permute.xlu1 %v986_v34  ;;  %vm443_vm0 = vcmask 1043456   ;;  %v987_v37 = vmov 0.0   ;;  %vm534_vm1 = vcmask 1040384  }
  0x1f   : > { %s1160_s21 = smov (!%p285_p1, %s973_s21), 1  ;;  %848 = vmatpush3.msra.mxu0 %v320_v1  ;;  %v318_v5 = vld [vmem:[#allocation2 + $0x68] sm:$0xff]  ;;  %v333_v6 = vld [vmem:[#allocation2 + $0xe0] sm:$0xff]  ;;  %v332_v8 = vld [vmem:[#allocation2 + $0xd8] sm:$0xff]  ;;  %926 = vset.pattern.permute.xlu0 %v986_v34  ;;  %s988_s26 = smov 114   ;;  %vm440_vm2 = vcmask 31744  }
  0x20   : > { %849 = vmatprep.subr.mxu0 %v335_v2  ;;  %s846_s11 = sshll.u32 %s1160_s21, 3  ;;  %v317_v7 = vld [vmem:[#allocation2 + $0x60] sm:$0xff]  ;;  %s882_s12 = smul.u32 40, %s1160_s21  ;;  %v316_v9 = vld [vmem:[#allocation2 + $0x58] sm:$0xff]  ;;  %v331_v10 = vld [vmem:[#allocation2 + $0xd0] sm:$0xff]  ;;  %512 = vmatprep.mubr.f32.mxu1 %v987_v37  ;;  %vm531_vm3 = vcmask 72704  }
  0x21   : > { %850 = vmatpush3.msra.mxu0 %v319_v3  ;;  %s293_s15 = scalar_lea.vmem %s1146_s0, %s846_s11  ;;  %v315_v11 = vld [vmem:[#allocation2 + $0x50] sm:$0xff]  ;;  %v330_v12 = vld [vmem:[#allocation2 + $0xc8] sm:$0xff]  ;;  %v329_v16 = vld [vmem:[#allocation2 + $0xc0] sm:$0xff]  ;;  %s989_s27 = smov 127   ;;  %v418_v48 = vshrl.u32 %v417_v42, 7  ;;  %vm630_vm4 = vcmask 293888  }
  0x22   : > { %851 = vmatprep.subr.mxu0 %v334_v4  ;;  %s1076_s18 = scalar_lea.vmem %s1152_s6, %s882_s12  ;;  %v303_v13 = vld [vmem:[%s293_s15] sm:$0xff]  ;;  %v314_v14 = vld [vmem:[#allocation2 + $0x48] sm:$0xff]  ;;  %v328_v18 = vld [vmem:[#allocation2 + $0xb8] sm:$0xff]  ;;  %s990_s28 = smov 123  }
  0x23   : > { %852 = vmatpush3.msra.mxu0 %v318_v5  ;;  %304 = vst [vmem:[%s1076_s18] sm:$0xff] %v303_v13  ;;  %v338_v15 = vcombine.high %v303_v13, %v303_v13  ;;  %v313_v17 = vld [vmem:[#allocation2 + $0x40] sm:$0xff]  ;;  %v312_v19 = vld [vmem:[#allocation2 + $0x38] sm:$0xff]  ;;  %v327_v20 = vld [vmem:[#allocation2 + $0xb0] sm:$0xff]  ;;  %v419_v54 = vsub.s32 0, %v418_v48  ;;  %v423_v55 = vsub.s32 1, %v418_v48 }
  0x24   : > { %853 = vmatprep.subr.mxu0 %v333_v6  ;;  %v311_v21 = vld [vmem:[#allocation2 + $0x30] sm:$0xff]  ;;  %v326_v22 = vld [vmem:[#allocation2 + $0xa8] sm:$0xff]  ;;  %v325_v24 = vld [vmem:[#allocation2 + $0xa0] sm:$0xff] }
  0x25   : > { %854 = vmatpush3.msra.mxu0 %v317_v7  ;;  %404 = vmatprep.mubr.f32.mxu0 %v338_v15  ;;  %v310_v23 = vld [vmem:[#allocation2 + $0x28] sm:$0xff]  ;;  %v309_v25 = vld [vmem:[#allocation2 + $0x20] sm:$0xff]  ;;  %v324_v26 = vld [vmem:[#allocation2 + $0x98] sm:$0xff] }
  0x26   : > { %855 = vmatprep.subr.mxu0 %v332_v8  ;;  %v308_v27 = vld [vmem:[#allocation2 + $0x18] sm:$0xff]  ;;  %v323_v28 = vld [vmem:[#allocation2 + $0x90] sm:$0xff]  ;;  %v322_v30 = vld [vmem:[#allocation2 + $0x88] sm:$0xff] }
  0x27   : > { %856 = vmatpush3.msra.mxu0 %v316_v9  ;;  %v307_v29 = vld [vmem:[#allocation2 + $0x10] sm:$0xff]  ;;  %v306_v31 = vld [vmem:[#allocation2 + $0x8] sm:$0xff]  ;;  %v321_v32 = vld [vmem:[#allocation2 + $0x80] sm:$0xff] }
  0x28   : > { %857 = vmatprep.subr.mxu0 %v331_v10  ;;  %v305_v33 = vld [vmem:[#allocation2] sm:$0xff]  ;;  %v528_v38 = vld [vmem:[%s1150_s4 + $0x18] sm:$0x1]  ;;  %v527_v43 = vld [vmem:[%s1150_s4 + $0x10] sm:$0x1] }
  0x29   : > { %858 = vmatpush3.msra.mxu0 %v315_v11  ;;  %v435_v35 = vld [vmem:[%s1149_s3] sm:$0xff]  ;;  %v526_v45 = vld [vmem:[%s1150_s4 + $0x8] sm:$0xff]  ;;  %v625_v51 = vld [vmem:[%s1151_s5 + $0x38] sm:$0xff] }
  0x2a   : > { %859 = vmatprep.subr.mxu0 %v330_v12  ;;  %v439_v36 = vcombine.high %v435_v35, %v435_v35  ;;  %v525_v46 = vld [vmem:[%s1150_s4] sm:$0xff]  ;;  %v627_v47 = vld [vmem:[%s1151_s5 + $0x48] sm:$0xf]  ;;  %v624_v52 = vld [vmem:[%s1151_s5 + $0x30] sm:$0xff] }
  0x2b   : > { %860 = vmatpush3.msra.mxu0 %v314_v14  ;;  %v626_v49 = vld [vmem:[%s1151_s5 + $0x40] sm:$0xf]  ;;  %v623_v53 = vld [vmem:[%s1151_s5 + $0x28] sm:$0xff]  ;;  %v621_v58 = vld [vmem:[%s1151_s5 + $0x18] sm:$0xff] }
  0x2c   : > { %861 = vmatprep.subr.mxu0 %v329_v16  ;;  %832 = vmatprep.subr.msk.mxu1 %vm443_vm0, %v439_v36  ;;  %v622_v56 = vld [vmem:[%s1151_s5 + $0x20] sm:$0xff]  ;;  %v620_v60 = vld [vmem:[%s1151_s5 + $0x10] sm:$0xff]  ;;  %v619_v61 = vld [vmem:[%s1151_s5 + $0x8] sm:$0xff] }
  0x2d   : > { %862 = vmatpush3.msra.mxu0 %v313_v17  ;;  %833 = vmatpush1.msk.msra.mxu1 %vm443_vm0, %v435_v35  ;;  %v410_v57 = vld [vmem:[%s1148_s2] sm:$0x3] }
  0x2e   : > { %863 = vmatprep.subr.mxu0 %v328_v18  ;;  %836 = vmatprep.subr.msk.mxu1 %vm534_vm1, %v528_v38  ;;  %v420_v62 = vrot.slane %v410_v57, %v419_v54  ;;  %v424_v63 = vrot.slane %v410_v57, %v423_v55  ;;  %v618_v0 = vld [vmem:[%s1151_s5] sm:$0xff] }
  0x2f   : > { %864 = vmatpush3.msra.mxu0 %v312_v19 }
  0x30   : > { %865 = vmatprep.subr.mxu0 %v327_v20 }
  0x31   : > { %866 = vmatpush3.msra.mxu0 %v311_v21 }
  0x32   : > { %867 = vmatprep.subr.mxu0 %v326_v22 }
  0x33   : > { %868 = vmatpush3.msra.mxu0 %v310_v23 }
  0x34   : > { %869 = vmatprep.subr.mxu0 %v325_v24 }
  0x35   : > { %870 = vmatpush3.msra.mxu0 %v309_v25 }
  0x36   : > { %871 = vmatprep.subr.mxu0 %v324_v26 }
  0x37   : > { %872 = vmatpush3.msra.mxu0 %v308_v27 }
  0x38   : > { %873 = vmatprep.subr.mxu0 %v323_v28 }
  0x39   : > { %874 = vmatpush3.msra.mxu0 %v307_v29 }
  0x3a   : > { %875 = vmatprep.subr.mxu0 %v322_v30 }
  0x3b   : > { %876 = vmatpush3.msra.mxu0 %v306_v31 }
  0x3c   : > { %877 = vmatprep.subr.mxu0 %v321_v32 }
  0x3d   : > { %878 = vmatpush3.msra.mxu0 %v305_v33 }
  0x3e   : > { %405 = vmatmul.mubr.f32.vlgmr.msra.gmra.mxu0 %v303_v13 }
  0xfe   : > { %v879_v39 = vpop.f32.mrf.mxu0 }
 0x100   : > { %v880_v40 = vpop.f32.mrf.mxu0 }
 0x101   : > { %v881_v41 = vadd.f32 %v880_v40, %v879_v39 }
 0x103   : > { %628 = vrot.lane.b32.xlu1 %v881_v41, %s988_s26  ;;  %436 = vrot.lane.b32.xlu0 %v881_v41, %s989_s27 }
 0x107   : > { %413 = vperm.xlu1 %925, %v881_v41   ;;  %529 = vrot.lane.b32.xlu0 %v881_v41, %s990_s28 }
 0x175   : > { %v437_v44 = vpop.permute.xlu0 %436  ;;  %v629_v59 = vpop.permute.xlu1 %628 }
 0x176   : > { %834 = vmatmul.mubr.msk.f32.vlgmr.msra.gmra.mxu1 %vm440_vm2, %v437_v44 }
 0x177   : > { %837 = vmatpush1.msk.msra.mxu1 %vm534_vm1, %v527_v43  ;;  %605 = vmatprep.mubr.f32.mxu1 %v987_v37 }
 0x178   : > { %571 = vmatprep.subr.mxu1 %v526_v45 }
 0x179   : > { %572 = vmatpush1.msra.mxu1 %v525_v46  ;;  %v530_v50 = vpop.permute.xlu0 %529 }
 0x17a   : > { %840 = vmatprep.subr.msk.mxu1 %vm443_vm0, %v627_v47  ;;  %838 = vmatmul.mubr.msk.f32.vlgmr.msra.gmra.mxu1 %vm531_vm3, %v530_v50 }
 0x17b   : > { %841 = vmatpush1.msk.msra.mxu1 %vm443_vm0, %v626_v49  ;;  %703 = vmatprep.mubr.f32.mxu1 %v987_v37 }
 0x17c   : > { %663 = vmatprep.subr.mxu1 %v625_v51 }
 0x17d   : > { %664 = vmatpush1.msra.mxu1 %v624_v52 }
 0x17e   : > { %665 = vmatprep.subr.mxu1 %v623_v53 }
 0x17f   : > { %666 = vmatpush1.msra.mxu1 %v622_v56 }
 0x180   : > { %667 = vmatprep.subr.mxu1 %v621_v58 }
 0x181   : > { %668 = vmatpush1.msra.mxu1 %v620_v60 }
 0x182   : > { %669 = vmatprep.subr.mxu1 %v619_v61  ;;  %v414_v1 = vpop.permute.xlu1 %413 }
 0x183   : > { %v427_v2 = vmul.f32 %v420_v62, %v414_v1  ;;  %v428_v3 = vmul.f32 %v424_v63, %v414_v1  ;;  %670 = vmatpush1.msra.mxu1 %v618_v0 }
 0x184   : > { %842 = vmatmul.mubr.msk.f32.vlgmr.msra.gmra.mxu1 %vm630_vm4, %v629_v59 }
 0x185   : > { %v431_v4 = vcombine.low %v427_v2, %v428_v3 }
 0x187   : > { %831 = vst [vmem:[%s1076_s18 + $0x8] sm:$0xff] %v431_v4 }
 0x236   : > { %v514_v5 = vpop.f32.mrf.mxu1 }
 0x238   : > { %v516_v6 = vpop.f32.mrf.mxu1 }
 0x239   : > { %v521_v7 = vcombine.low %v514_v5, %v516_v6 }
 0x23a   : > { %v607_v8 = vpop.f32.mrf.mxu1 }
 0x23b   : > { %835 = vst [vmem:[%s1076_s18 + $0x10] sm:$0xff] %v521_v7 }
 0x23c   : > { %v609_v9 = vpop.f32.mrf.mxu1 }
 0x23d   : > { %v614_v10 = vcombine.low %v607_v8, %v609_v9 }
 0x23f   : > { %839 = vst [vmem:[%s1076_s18 + $0x18] sm:$0xff] %v614_v10 }
 0x244   : > { %v705_v11 = vpop.f32.mrf.mxu1 }
 0x246   : > { %v707_v12 = vpop.f32.mrf.mxu1 }
 0x247   : > { %v712_v13 = vcombine.low %v705_v11, %v707_v12 }
 0x249   : > { %843 = vst [vmem:[%s1076_s18 + $0x20] sm:$0xff] %v712_v13 }
 0x24a PF: > { %s17_s23 = sadd.s32 1, %s981_s23   ;;  %s1155_s21 = smov %s977_s22 }
 0x24b   : > { %p14_p2 = scmp.ge.s32.totalorder %s17_s23, 4   ;;  %s1156_s22 = smov %s1158_s25 }
 0x24d   :  { %16 = sbr.rel (!%p14_p2) target bundleno = 2 (0x2), region = 83 }
 0x252   :  { %745 = vsyncpa [#allocation3], 1 }
 0x253   :  { %747 = vsyncpa [#allocation3 + $0x1], 1 }

</bundles_post_ra>
